<compile_context>
chip_gen: v5e
topology: v5e:2x2
jax: 0.10.0
libtpu: 0.0.40
codegen_flags: <defaults>
</compile_context>

<pallas_src>
import functools

import jax
import jax.numpy as jnp
from jax.experimental import pallas as pl
from jax.experimental.pallas import tpu as pltpu

_VMEM = pl.BlockSpec(memory_space=pltpu.MemorySpace.VMEM)

WIDTH = 128          # packed lane width (one full vreg of lanes)
CONST_COL = WIDTH - 1  # constant-1 carrier column (bias folding)


# ------------------------------------------------------------------
# Fused forward kernel: 7 wide matmuls, 3 ReLUs, 1 elementwise product.
# ------------------------------------------------------------------

def _fused_forward_kernel(x_ref, w_ref, wout_ref, o_ref):
    def dot_bf16(h, w):
        # bf16 MXU path with f32 accumulation.
        return jnp.dot(h.astype(jnp.bfloat16), w,
                       preferred_element_type=jnp.float32)

    h = x_ref[...]                                   # (B, 128) bf16 packed input
    # Packed encoders: block-diagonal [audio|text|video] per layer, biases folded
    # via the constant carrier column.
    h = jnp.maximum(dot_bf16(h, w_ref[0]), 0.0)      # encoder layer 1 + ReLU
    h = jnp.maximum(dot_bf16(h, w_ref[1]), 0.0)      # encoder layer 2 + ReLU
    h = jnp.maximum(dot_bf16(h, w_ref[2]), 0.0)      # encoder layer 3 + ReLU

    # Six folded Seq blocks packed into two matmuls:
    #   sx columns = [at_, ta_, va_], sy columns = [av_, tv_, vt_]
    # so sx*sy columns = [a, t, v] == the operand order of fc_att's concat.
    sx = dot_bf16(h, w_ref[3])
    sy = dot_bf16(h, w_ref[4])
    p = sx * sy                                      # f32 elementwise (VPU)

    # fc_att folded with dense (no activation between them), then ReLU.
    x = jnp.maximum(dot_bf16(p, w_ref[5]), 0.0)

    # out_proj1 and fc_out_2 merged into one lane-contiguous store.
    o_ref[...] = dot_bf16(x, wout_ref[...])


def model_cah_fused(audio_x, text_x, video_x, w_slab, w_out):
    B = audio_x.shape[0]
    used = audio_x.shape[1] + text_x.shape[1] + video_x.shape[1]
    nc1 = w_out.shape[1]

    # Pack the three modality inputs into one (B, 128) slab:
    #   [audio | text | video | zeros | 1.0]   (lane 127 carries the biases)
    x = jnp.concatenate(
        [audio_x, text_x, video_x,
         jnp.zeros((B, WIDTH - 1 - used), audio_x.dtype),
         jnp.ones((B, 1), audio_x.dtype)],
        axis=1).astype(jnp.bfloat16)

    flops = 2 * B * WIDTH * (6 * WIDTH + nc1)
    bytes_accessed = (x.size * 2 + w_slab.size * 2 + w_out.size * 2
                      + B * nc1 * 4)

    out = pl.pallas_call(
        _fused_forward_kernel,
        out_shape=jax.ShapeDtypeStruct((B, nc1), jnp.float32),
        in_specs=[_VMEM, _VMEM, _VMEM],
        out_specs=_VMEM,
        cost_estimate=pl.CostEstimate(flops=flops, transcendentals=0,
                                      bytes_accessed=bytes_accessed),
    )(x, w_slab, w_out)

    x1 = out[:, :nc1 - 1]
    x2 = out[:, nc1 - 1:]
    return x1, x2


@functools.partial(jax.jit, static_argnames=("multi",))
def model_cah_forward(mods, w_slab, w_out, multi=True):
    audio_x, text_x, video_x = mods
    x1, x2 = model_cah_fused(audio_x, text_x, video_x, w_slab, w_out)
    if multi:
        return x1, x2
    return x1


# ------------------------------------------------------------------
# Parameter construction (mirrors the PyTorch module)
# ------------------------------------------------------------------

def _linear_params(key, in_dim, out_dim, scale=0.05):
    kw, kb = jax.random.split(key)
    w = scale * jax.random.normal(kw, (in_dim, out_dim), jnp.float32)
    b = scale * jax.random.normal(kb, (1, out_dim), jnp.float32)
    return w, b


def init_model_cah(key, input_sizes, hidden_dim, nhead, num_classes):
    del nhead  # softmax over a length-1 key axis makes head count irrelevant
    keys = iter(jax.random.split(key, 64))

    def encoder_params(in_dim):
        p = []
        p += _linear_params(next(keys), in_dim, hidden_dim)
        p += _linear_params(next(keys), hidden_dim, hidden_dim)
        p += _linear_params(next(keys), hidden_dim, hidden_dim)
        return tuple(p)

    def attn_params():
        p = []
        for _ in range(4):  # q, k, v, o projections (q/k are dead compute)
            p += _linear_params(next(keys), hidden_dim, hidden_dim)
        return tuple(p)

    params = {
        "audio_enc": encoder_params(input_sizes[0]),
        "text_enc": encoder_params(input_sizes[1]),
        "video_enc": encoder_params(input_sizes[2]),
        "mult_at": attn_params(),
        "mult_ta": attn_params(),
        "mult_va": attn_params(),
        "mult_av": attn_params(),
        "mult_tv": attn_params(),
        "mult_vt": attn_params(),
    }
    w_att, b_att = _linear_params(next(keys), 3 * hidden_dim, hidden_dim)
    wd, bd = _linear_params(next(keys), hidden_dim, hidden_dim)
    w1, b1 = _linear_params(next(keys), hidden_dim, num_classes)   # out_proj1
    w2, b2 = _linear_params(next(keys), hidden_dim, 1)             # fc_out_2
    params["head"] = (w_att, b_att, wd, bd, w1, b1, w2, b2)
    # NOTE: out_proj2 and fc_out_1 exist in the PyTorch module but are unused
    # in forward(), so they are not materialized here.
    return params


# ------------------------------------------------------------------
# One-time weight packing (hoisted out of the forward path).
# ------------------------------------------------------------------

def pack_params(params, input_sizes, hidden_dim, num_classes,
                dtype=jnp.bfloat16):
    """Pack all weights into (6, 128, 128) + (128, num_classes+1) slabs.

    Packed hidden layout (lanes): audio 0:H, text H:2H, video 2H:3H,
    zeros 3H:127, constant 1.0 at lane 127 (bias carrier).
    """
    H = hidden_dim
    A, T, V = input_sizes
    CC = CONST_COL
    NC1 = num_classes + 1

    def fold_seq(p):
        _wq, _bq, _wk, _bk, wv, bv, wo, bo = p
        return wv @ wo, bv @ wo + bo                  # (H,H), (1,H)

    slab = jnp.zeros((6, WIDTH, WIDTH), jnp.float32)

    def put(s, slot, r0, c0, w):
        return s.at[slot, r0:r0 + w.shape[0], c0:c0 + w.shape[1]].set(w)

    aw1, ab1, aw2, ab2, aw3, ab3 = params["audio_enc"]
    tw1, tb1, tw2, tb2, tw3, tb3 = params["text_enc"]
    vw1, vb1, vw2, vb2, vw3, vb3 = params["video_enc"]

    # --- slot 0: encoder layer 1 (block-diagonal over modalities) ---
    slab = put(slab, 0, 0, 0, aw1)
    slab = put(slab, 0, A, H, tw1)
    slab = put(slab, 0, A + T, 2 * H, vw1)
    slab = put(slab, 0, CC, 0, ab1)
    slab = put(slab, 0, CC, H, tb1)
    slab = put(slab, 0, CC, 2 * H, vb1)

    # --- slots 1, 2: encoder layers 2 and 3 ---
    for slot, (wa, ba, wt, bt, wv_, bv_) in (
            (1, (aw2, ab2, tw2, tb2, vw2, vb2)),
            (2, (aw3, ab3, tw3, tb3, vw3, vb3))):
        slab = put(slab, slot, 0, 0, wa)
        slab = put(slab, slot, H, H, wt)
        slab = put(slab, slot, 2 * H, 2 * H, wv_)
        slab = put(slab, slot, CC, 0, ba)
        slab = put(slab, slot, CC, H, bt)
        slab = put(slab, slot, CC, 2 * H, bv_)

    # --- slots 3, 4: the six folded Seq blocks (kv-side only) ---
    w_at, b_at = fold_seq(params["mult_at"])   # mult_at(audio, text)  -> kv = text
    w_ta, b_ta = fold_seq(params["mult_ta"])   # mult_ta(text, audio)  -> kv = audio
    w_va, b_va = fold_seq(params["mult_va"])   # mult_va(video, audio) -> kv = audio
    w_av, b_av = fold_seq(params["mult_av"])   # mult_av(audio, video) -> kv = video
    w_tv, b_tv = fold_seq(params["mult_tv"])   # mult_tv(text, video)  -> kv = video
    w_vt, b_vt = fold_seq(params["mult_vt"])   # mult_vt(video, text)  -> kv = text

    # slot 3 output columns: [at_, ta_, va_]
    slab = put(slab, 3, H, 0, w_at)
    slab = put(slab, 3, 0, H, w_ta)
    slab = put(slab, 3, 0, 2 * H, w_va)
    slab = put(slab, 3, CC, 0, b_at)
    slab = put(slab, 3, CC, H, b_ta)
    slab = put(slab, 3, CC, 2 * H, b_va)

    # slot 4 output columns: [av_, tv_, vt_]
    slab = put(slab, 4, 2 * H, 0, w_av)
    slab = put(slab, 4, 2 * H, H, w_tv)
    slab = put(slab, 4, H, 2 * H, w_vt)
    slab = put(slab, 4, CC, 0, b_av)
    slab = put(slab, 4, CC, H, b_tv)
    slab = put(slab, 4, CC, 2 * H, b_vt)

    # --- slot 5: fc_att folded with dense (no activation between them) ---
    w_att, b_att, wd, bd, w1, b1, w2, b2 = params["head"]
    w_fcd = w_att @ wd                         # (3H, H)
    b_fcd = b_att @ wd + bd                    # (1, H)
    slab = put(slab, 5, 0, 0, w_fcd)
    slab = put(slab, 5, CC, 0, b_fcd)

    # constant-1 carrier: each layer forwards lane CC -> lane CC
    for slot in range(6):
        slab = slab.at[slot, CC, CC].set(1.0)

    # --- merged output head: out_proj1 ++ fc_out_2 ---
    w_out = jnp.zeros((WIDTH, NC1), jnp.float32)
    w_out = w_out.at[0:H, 0:num_classes].set(w1)
    w_out = w_out.at[0:H, num_classes:NC1].set(w2)
    w_out = w_out.at[CC, 0:num_classes].set(b1[0])
    w_out = w_out.at[CC, num_classes:NC1].set(b2[0])

    return slab.astype(dtype), w_out.astype(dtype)


# ------------------------------------------------------------------
# Pure-JAX f32 reference (mirrors the PyTorch forward) for sanity check.
# ------------------------------------------------------------------

def reference_forward(mods, params):
    audio_x, text_x, video_x = mods

    def mlp(x, p):
        w1, b1, w2, b2, w3, b3 = p
        h = jax.nn.relu(x @ w1 + b1)
        h = jax.nn.relu(h @ w2 + b2)
        return jax.nn.relu(h @ w3 + b3)

    a_h = mlp(audio_x, params["audio_enc"])
    t_h = mlp(text_x, params["text_enc"])
    v_h = mlp(video_x, params["video_enc"])

    def seq(kv, p):
        _wq, _bq, _wk, _bk, wv, bv, wo, bo = p
        return (kv @ wv + bv) @ wo + bo

    at = seq(t_h, params["mult_at"])
    ta = seq(a_h, params["mult_ta"])
    va = seq(a_h, params["mult_va"])
    av = seq(v_h, params["mult_av"])
    tv = seq(v_h, params["mult_tv"])
    vt = seq(t_h, params["mult_vt"])
    a, t, v = at * av, ta * tv, va * vt

    w_att, b_att, wd, bd, w1, b1, w2, b2 = params["head"]
    fused = jnp.concatenate([a, t, v], axis=1) @ w_att + b_att
    x = jax.nn.relu(fused @ wd + bd)
    return x @ w1 + b1, x @ w2 + b2


# ------------------------------------------------------------------
# main
# ------------------------------------------------------------------

if __name__ == "__main__":
    B = 2
    input_sizes = (16, 24, 20)   # audio_dim, text_dim, video_dim
    hidden_dim = 32              # output_size
    nhead = 4
    num_classes = 3
    multi = True

    key = jax.random.PRNGKey(0)
    k_params, ka, kt, kv = jax.random.split(key, 4)

    params = init_model_cah(k_params, input_sizes, hidden_dim, nhead, num_classes)
    # Pack once (hoisted out of the forward path, per perf review).
    w_slab, w_out = pack_params(params, input_sizes, hidden_dim, num_classes)

    audio_x = jax.random.normal(ka, (B, input_sizes[0]), jnp.float32)
    text_x = jax.random.normal(kt, (B, input_sizes[1]), jnp.float32)
    video_x = jax.random.normal(kv, (B, input_sizes[2]), jnp.float32)
    mods = (audio_x, text_x, video_x)

    x1, x2 = model_cah_forward(mods, w_slab, w_out, multi=multi)
    jax.block_until_ready((x1, x2))

    assert x1.shape == (B, num_classes) and x2.shape == (B, 1)

    # Sanity check against the unfused f32 reference (bf16 MXU => loose tol).
    r1, r2 = reference_forward(mods, params)
    assert jnp.max(jnp.abs(x1 - r1)) < 3e-2
    assert jnp.max(jnp.abs(x2 - r2)) < 3e-2

    print("KERNEL_OK")
</pallas_src>

<mosaic_0001>
module attributes {stable_mosaic.version = 11 : i64} {
  func.func @_fused_forward_kernel(%arg0: memref<2x128xbf16, #tpu.memory_space<vmem>>, %arg1: memref<6x128x128xbf16, #tpu.memory_space<vmem>>, %arg2: memref<128x4xbf16, #tpu.memory_space<vmem>>, %arg3: memref<2x4xf32, #tpu.memory_space<vmem>>) attributes {dimension_semantics = [], scalar_prefetch = 0 : i64, scratch_operands = 0 : i64, tpu.core_type = #tpu.core_type<tc>} {
    %c0 = arith.constant 0 : index
    %c0_0 = arith.constant 0 : index
    %0 = vector.load %arg0[%c0, %c0_0] : memref<2x128xbf16, #tpu.memory_space<vmem>>, vector<2x128xbf16>
    %c0_1 = arith.constant 0 : index
    %c0_2 = arith.constant 0 : index
    %c0_3 = arith.constant 0 : index
    %1 = vector.load %arg1[%c0_1, %c0_2, %c0_3] : memref<6x128x128xbf16, #tpu.memory_space<vmem>>, vector<1x128x128xbf16>
    %2 = vector.shape_cast %1 : vector<1x128x128xbf16> to vector<128x128xbf16>
    %cst = arith.constant dense<0.000000e+00> : vector<2x128xf32>
    %3 = tpu.matmul %0, %2, %cst {dimension_numbers = #tpu.dot_dimension_numbers<[1], [0], [0], [1], [0, 0, 1, 1], [], []>} : vector<2x128xbf16>, vector<128x128xbf16>, vector<2x128xf32> -> vector<2x128xf32>
    %cst_4 = arith.constant 0.000000e+00 : f32
    %4 = vector.broadcast %cst_4 : f32 to vector<2x128xf32>
    %5 = arith.maximumf %3, %4 : vector<2x128xf32>
    %c1 = arith.constant 1 : index
    %c0_5 = arith.constant 0 : index
    %c0_6 = arith.constant 0 : index
    %6 = vector.load %arg1[%c1, %c0_5, %c0_6] : memref<6x128x128xbf16, #tpu.memory_space<vmem>>, vector<1x128x128xbf16>
    %7 = vector.shape_cast %6 : vector<1x128x128xbf16> to vector<128x128xbf16>
    %8 = arith.truncf %5 : vector<2x128xf32> to vector<2x128xbf16>
    %cst_7 = arith.constant dense<0.000000e+00> : vector<2x128xf32>
    %9 = tpu.matmul %8, %7, %cst_7 {dimension_numbers = #tpu.dot_dimension_numbers<[1], [0], [0], [1], [0, 0, 1, 1], [], []>} : vector<2x128xbf16>, vector<128x128xbf16>, vector<2x128xf32> -> vector<2x128xf32>
    %cst_8 = arith.constant 0.000000e+00 : f32
    %10 = vector.broadcast %cst_8 : f32 to vector<2x128xf32>
    %11 = arith.maximumf %9, %10 : vector<2x128xf32>
    %c2 = arith.constant 2 : index
    %c0_9 = arith.constant 0 : index
    %c0_10 = arith.constant 0 : index
    %12 = vector.load %arg1[%c2, %c0_9, %c0_10] : memref<6x128x128xbf16, #tpu.memory_space<vmem>>, vector<1x128x128xbf16>
    %13 = vector.shape_cast %12 : vector<1x128x128xbf16> to vector<128x128xbf16>
    %14 = arith.truncf %11 : vector<2x128xf32> to vector<2x128xbf16>
    %cst_11 = arith.constant dense<0.000000e+00> : vector<2x128xf32>
    %15 = tpu.matmul %14, %13, %cst_11 {dimension_numbers = #tpu.dot_dimension_numbers<[1], [0], [0], [1], [0, 0, 1, 1], [], []>} : vector<2x128xbf16>, vector<128x128xbf16>, vector<2x128xf32> -> vector<2x128xf32>
    %cst_12 = arith.constant 0.000000e+00 : f32
    %16 = vector.broadcast %cst_12 : f32 to vector<2x128xf32>
    %17 = arith.maximumf %15, %16 : vector<2x128xf32>
    %c3 = arith.constant 3 : index
    %c0_13 = arith.constant 0 : index
    %c0_14 = arith.constant 0 : index
    %18 = vector.load %arg1[%c3, %c0_13, %c0_14] : memref<6x128x128xbf16, #tpu.memory_space<vmem>>, vector<1x128x128xbf16>
    %19 = vector.shape_cast %18 : vector<1x128x128xbf16> to vector<128x128xbf16>
    %20 = arith.truncf %17 : vector<2x128xf32> to vector<2x128xbf16>
    %cst_15 = arith.constant dense<0.000000e+00> : vector<2x128xf32>
    %21 = tpu.matmul %20, %19, %cst_15 {dimension_numbers = #tpu.dot_dimension_numbers<[1], [0], [0], [1], [0, 0, 1, 1], [], []>} : vector<2x128xbf16>, vector<128x128xbf16>, vector<2x128xf32> -> vector<2x128xf32>
    %c4 = arith.constant 4 : index
    %c0_16 = arith.constant 0 : index
    %c0_17 = arith.constant 0 : index
    %22 = vector.load %arg1[%c4, %c0_16, %c0_17] : memref<6x128x128xbf16, #tpu.memory_space<vmem>>, vector<1x128x128xbf16>
    %23 = vector.shape_cast %22 : vector<1x128x128xbf16> to vector<128x128xbf16>
    %24 = arith.truncf %17 : vector<2x128xf32> to vector<2x128xbf16>
    %cst_18 = arith.constant dense<0.000000e+00> : vector<2x128xf32>
    %25 = tpu.matmul %24, %23, %cst_18 {dimension_numbers = #tpu.dot_dimension_numbers<[1], [0], [0], [1], [0, 0, 1, 1], [], []>} : vector<2x128xbf16>, vector<128x128xbf16>, vector<2x128xf32> -> vector<2x128xf32>
    %26 = arith.mulf %21, %25 : vector<2x128xf32>
    %c5 = arith.constant 5 : index
    %c0_19 = arith.constant 0 : index
    %c0_20 = arith.constant 0 : index
    %27 = vector.load %arg1[%c5, %c0_19, %c0_20] : memref<6x128x128xbf16, #tpu.memory_space<vmem>>, vector<1x128x128xbf16>
    %28 = vector.shape_cast %27 : vector<1x128x128xbf16> to vector<128x128xbf16>
    %29 = arith.truncf %26 : vector<2x128xf32> to vector<2x128xbf16>
    %cst_21 = arith.constant dense<0.000000e+00> : vector<2x128xf32>
    %30 = tpu.matmul %29, %28, %cst_21 {dimension_numbers = #tpu.dot_dimension_numbers<[1], [0], [0], [1], [0, 0, 1, 1], [], []>} : vector<2x128xbf16>, vector<128x128xbf16>, vector<2x128xf32> -> vector<2x128xf32>
    %cst_22 = arith.constant 0.000000e+00 : f32
    %31 = vector.broadcast %cst_22 : f32 to vector<2x128xf32>
    %32 = arith.maximumf %30, %31 : vector<2x128xf32>
    %c0_23 = arith.constant 0 : index
    %c0_24 = arith.constant 0 : index
    %33 = vector.load %arg2[%c0_23, %c0_24] : memref<128x4xbf16, #tpu.memory_space<vmem>>, vector<128x4xbf16>
    %34 = arith.truncf %32 : vector<2x128xf32> to vector<2x128xbf16>
    %cst_25 = arith.constant dense<0.000000e+00> : vector<2x4xf32>
    %35 = tpu.matmul %34, %33, %cst_25 {dimension_numbers = #tpu.dot_dimension_numbers<[1], [0], [0], [1], [0, 0, 1, 1], [], []>} : vector<2x128xbf16>, vector<128x4xbf16>, vector<2x4xf32> -> vector<2x4xf32>
    %c0_26 = arith.constant 0 : index
    %c0_27 = arith.constant 0 : index
    %36 = vector.load %arg3[%c0_26, %c0_27] : memref<2x4xf32, #tpu.memory_space<vmem>>, vector<2x4xf32>
    tpu.vector_store %arg3[%c0_26, %c0_27], %35 {strides = array<i32>} : memref<2x4xf32, #tpu.memory_space<vmem>>, vector<2x4xf32>,
    return
  }
}

</mosaic_0001>

<bundles_post_ra>
// kernel: model_cah_forward.1
= control target key start
LH: loop header
LB: loop body
LE: loop exit
PB: predicated region body
PF: predicated region fallthrough
CT: control target
= control target key end

     0   :  { %8 = vsyncpa [#allocation3], 0  ;;  %s901_s15 = smov [#allocation2]   ;;  %s902_s17 = smov 64   ;;  %s957_s0 = inlined_call_operand.vmem [shape: bf16[2,128], index: 0, kind: input, shape index: {}]   ;;  %s958_s1 = inlined_call_operand.hbm [shape: bf16[6,128,128], index: 1, kind: input, shape index: {}]   ;;  %s959_s2 = inlined_call_operand.vmem [shape: bf16[128,4], index: 2, kind: input, shape index: {}]   ;;  %s960_s3 = inlined_call_operand.vmem [shape: f32[2,4], index: 3, kind: output, shape index: {}]  }
   0x1   :  { %s15_s14 = sshll.u32 %s958_s1, 4  ;;  %s17_s16 = sshll.u32 %s901_s15, 4  ;;  %s16_s14 = int_to_ptr.hbm [resolvable:$true] %s15_s14  ;;  %s18_s16 = int_to_ptr.vmem [resolvable:$true] %s17_s16 }
   0x2   :  { %s903_s18 = smov 4  }
   0x3   :  { %23 = dma.hbm_to_vmem [thread:$0]  %s16_s14, 6144, %s18_s16, [#allocation3], %s902_s17, %s902_s17, %s903_s18  }
   0x4   :  { %899 = dma.done.wait [#allocation3], 6144  }
   0x5   :  { %900 = vsyncadd [#allocation3], 4294961152  ;;  %v823_v0 = vld [vmem:[#allocation2 + $0x38] sm:$0xff]  ;;  %v822_v1 = vld [vmem:[#allocation2 + $0x30] sm:$0xff]  ;;  %vm585_vm0 = vcmask 25600  }
   0x6   :  { %95 = vmatpush.bf16.msra.mxu0 %v823_v0  ;;  %v831_v2 = vld [vmem:[#allocation2 + $0x78] sm:$0xff]  ;;  %v830_v3 = vld [vmem:[#allocation2 + $0x70] sm:$0xff]  ;;  %v821_v4 = vld [vmem:[#allocation2 + $0x28] sm:$0xff] }
   0x7   :  { %175 = vmatpush.bf16.msra.mxu1 %v831_v2  ;;  %v829_v5 = vld [vmem:[#allocation2 + $0x68] sm:$0xff]  ;;  %v820_v6 = vld [vmem:[#allocation2 + $0x20] sm:$0xff]  ;;  %v819_v8 = vld [vmem:[#allocation2 + $0x18] sm:$0xff] }
   0x8   :  { %v828_v7 = vld [vmem:[#allocation2 + $0x60] sm:$0xff]  ;;  %v827_v9 = vld [vmem:[#allocation2 + $0x58] sm:$0xff]  ;;  %v818_v10 = vld [vmem:[#allocation2 + $0x10] sm:$0xff] }
   0x9   :  { %v826_v11 = vld [vmem:[#allocation2 + $0x50] sm:$0xff]  ;;  %v817_v12 = vld [vmem:[#allocation2 + $0x8] sm:$0xff]  ;;  %v816_v14 = vld [vmem:[#allocation2] sm:$0xff] }
   0xa   :  { %96 = vmatpush.bf16.msra.mxu0 %v822_v1  ;;  %v825_v13 = vld [vmem:[#allocation2 + $0x48] sm:$0xff]  ;;  %v30_v15 = vld [vmem:[%s957_s0] sm:$0x1]  ;;  %v839_v17 = vld [vmem:[#allocation2 + $0xb8] sm:$0xff] }
   0xb   :  { %176 = vmatpush.bf16.msra.mxu1 %v830_v3  ;;  %v824_v16 = vld [vmem:[#allocation2 + $0x40] sm:$0xff]  ;;  %255 = vmatpush.bf16.msra.mxu2 %v839_v17  ;;  %v838_v18 = vld [vmem:[#allocation2 + $0xb0] sm:$0xff]  ;;  %v837_v19 = vld [vmem:[#allocation2 + $0xa8] sm:$0xff] }
   0xc   :  { %v836_v20 = vld [vmem:[#allocation2 + $0xa0] sm:$0xff]  ;;  %v835_v21 = vld [vmem:[#allocation2 + $0x98] sm:$0xff]  ;;  %v834_v22 = vld [vmem:[#allocation2 + $0x90] sm:$0xff] }
   0xd   :  { %v833_v23 = vld [vmem:[#allocation2 + $0x88] sm:$0xff]  ;;  %v832_v28 = vld [vmem:[#allocation2 + $0x80] sm:$0xff]  ;;  %v847_v29 = vld [vmem:[#allocation2 + $0xf8] sm:$0xff] }
   0xe   :  { %97 = vmatpush.bf16.msra.mxu0 %v821_v4  ;;  %v855_v30 = vld [vmem:[#allocation2 + $0x138] sm:$0xff]  ;;  %335 = vmatpush.bf16.msra.mxu3 %v847_v29  ;;  %v846_v31 = vld [vmem:[#allocation2 + $0xf0] sm:$0xff]  ;;  %v845_v33 = vld [vmem:[#allocation2 + $0xe8] sm:$0xff] }
   0xf   :  { %177 = vmatpush.bf16.msra.mxu1 %v829_v5  ;;  %256 = vmatpush.bf16.msra.mxu2 %v838_v18  ;;  %v854_v32 = vld [vmem:[#allocation2 + $0x130] sm:$0xff]  ;;  %v853_v34 = vld [vmem:[#allocation2 + $0x128] sm:$0xff]  ;;  %v844_v35 = vld [vmem:[#allocation2 + $0xe0] sm:$0xff] }
  0x10   :  { %v852_v36 = vld [vmem:[#allocation2 + $0x120] sm:$0xff]  ;;  %v843_v37 = vld [vmem:[#allocation2 + $0xd8] sm:$0xff]  ;;  %v842_v39 = vld [vmem:[#allocation2 + $0xd0] sm:$0xff] }
  0x11   :  { %v851_v38 = vld [vmem:[#allocation2 + $0x118] sm:$0xff]  ;;  %v850_v40 = vld [vmem:[#allocation2 + $0x110] sm:$0xff]  ;;  %v841_v41 = vld [vmem:[#allocation2 + $0xc8] sm:$0xff] }
  0x12   :  { %98 = vmatpush.bf16.msra.mxu0 %v820_v6  ;;  %336 = vmatpush.bf16.msra.mxu3 %v846_v31  ;;  %v849_v42 = vld [vmem:[#allocation2 + $0x108] sm:$0xff]  ;;  %v840_v47 = vld [vmem:[#allocation2 + $0xc0] sm:$0xff]  ;;  %v863_v49 = vld [vmem:[#allocation2 + $0x178] sm:$0xff] }
  0x13   :  { %178 = vmatpush.bf16.msra.mxu1 %v828_v7  ;;  %257 = vmatpush.bf16.msra.mxu2 %v837_v19  ;;  %v848_v48 = vld [vmem:[#allocation2 + $0x100] sm:$0xff]  ;;  %v862_v50 = vld [vmem:[#allocation2 + $0x170] sm:$0xff]  ;;  %v861_v51 = vld [vmem:[#allocation2 + $0x168] sm:$0xff] }
  0x14   :  { %v860_v52 = vld [vmem:[#allocation2 + $0x160] sm:$0xff]  ;;  %v859_v53 = vld [vmem:[#allocation2 + $0x158] sm:$0xff]  ;;  %v858_v58 = vld [vmem:[#allocation2 + $0x150] sm:$0xff] }
  0x15   :  { %v857_v59 = vld [vmem:[#allocation2 + $0x148] sm:$0xff]  ;;  %v856_v60 = vld [vmem:[#allocation2 + $0x140] sm:$0xff]  ;;  %v871_v61 = vld [vmem:[%s959_s2 + $0x38] sm:$0xff] }
  0x16   :  { %99 = vmatpush.bf16.msra.mxu0 %v819_v8  ;;  %337 = vmatpush.bf16.msra.mxu3 %v845_v33  ;;  %v870_v62 = vld [vmem:[%s959_s2 + $0x30] sm:$0xff]  ;;  %v869_v63 = vld [vmem:[%s959_s2 + $0x28] sm:$0xff]  ;;  %v868_v0 = vld [vmem:[%s959_s2 + $0x20] sm:$0xff] }
  0x17   :  { %179 = vmatpush.bf16.msra.mxu1 %v827_v9  ;;  %258 = vmatpush.bf16.msra.mxu2 %v836_v20  ;;  %v867_v1 = vld [vmem:[%s959_s2 + $0x18] sm:$0xff]  ;;  %v866_v3 = vld [vmem:[%s959_s2 + $0x10] sm:$0xff]  ;;  %v865_v4 = vld [vmem:[%s959_s2 + $0x8] sm:$0xff] }
  0x1a   :  { %100 = vmatpush.bf16.msra.mxu0 %v818_v10  ;;  %338 = vmatpush.bf16.msra.mxu3 %v844_v35  ;;  %v864_v10 = vld [vmem:[%s959_s2] sm:$0xff] }
  0x1b   :  { %180 = vmatpush.bf16.msra.mxu1 %v826_v11  ;;  %259 = vmatpush.bf16.msra.mxu2 %v835_v21 }
  0x1e   :  { %101 = vmatpush.bf16.msra.mxu0 %v817_v12  ;;  %339 = vmatpush.bf16.msra.mxu3 %v843_v37 }
  0x1f   :  { %181 = vmatpush.bf16.msra.mxu1 %v825_v13  ;;  %260 = vmatpush.bf16.msra.mxu2 %v834_v22 }
  0x22   :  { %102 = vmatpush.bf16.msra.mxu0 %v816_v14  ;;  %340 = vmatpush.bf16.msra.mxu3 %v842_v39 }
  0x23   :  { %182 = vmatpush.bf16.msra.mxu1 %v824_v16  ;;  %261 = vmatpush.bf16.msra.mxu2 %v833_v23 }
  0x25   :  { %103 = vmatmul.bf16.vlgmr.msra.gmra.mxu0 %v30_v15 }
  0x26   :  { %413 = vmatpush.bf16.msrb.mxu0 %v855_v30  ;;  %341 = vmatpush.bf16.msra.mxu3 %v841_v41 }
  0x27   :  { %262 = vmatpush.bf16.msra.mxu2 %v832_v28  ;;  %493 = vmatpush.bf16.msrb.mxu1 %v863_v49 }
  0x2a   :  { %414 = vmatpush.bf16.msrb.mxu0 %v854_v32  ;;  %342 = vmatpush.bf16.msra.mxu3 %v840_v47 }
  0x2b   :  { %494 = vmatpush.bf16.msrb.mxu1 %v862_v50  ;;  %572 = vmatpush.bf16.msrb.mxu2 %v871_v61 }
  0x2e   :  { %415 = vmatpush.bf16.msrb.mxu0 %v853_v34 }
  0x2f   :  { %495 = vmatpush.bf16.msrb.mxu1 %v861_v51  ;;  %573 = vmatpush.bf16.msrb.mxu2 %v870_v62 }
  0x32   :  { %416 = vmatpush.bf16.msrb.mxu0 %v852_v36 }
  0x33   :  { %496 = vmatpush.bf16.msrb.mxu1 %v860_v52  ;;  %574 = vmatpush.bf16.msrb.mxu2 %v869_v63 }
  0x36   :  { %417 = vmatpush.bf16.msrb.mxu0 %v851_v38 }
  0x37   :  { %497 = vmatpush.bf16.msrb.mxu1 %v859_v53  ;;  %575 = vmatpush.bf16.msrb.mxu2 %v868_v0 }
  0x3a   :  { %418 = vmatpush.bf16.msrb.mxu0 %v850_v40 }
  0x3b   :  { %498 = vmatpush.bf16.msrb.mxu1 %v858_v58  ;;  %576 = vmatpush.bf16.msrb.mxu2 %v867_v1 }
  0x3e   :  { %419 = vmatpush.bf16.msrb.mxu0 %v849_v42 }
  0x3f   :  { %499 = vmatpush.bf16.msrb.mxu1 %v857_v59  ;;  %577 = vmatpush.bf16.msrb.mxu2 %v866_v3 }
  0x42   :  { %420 = vmatpush.bf16.msrb.mxu0 %v848_v48 }
  0x43   :  { %500 = vmatpush.bf16.msrb.mxu1 %v856_v60  ;;  %578 = vmatpush.bf16.msrb.mxu2 %v865_v4 }
  0x47   :  { %579 = vmatpush.bf16.msrb.mxu2 %v864_v10 }
  0xa2   :  { %v104_v24 = vpop.f32.mrf.mxu0 }
  0xa3   :  { %v108_v25 = vmax.f32 %v104_v24, 0.0 }
  0xa5   :  { %v126_v26 = vpack.c.bf16 %v108_v25, %v108_v25 }
  0xa7   :  { %183 = vmatmul.bf16.vlgmr.msra.gmra.mxu1 %v126_v26 }
  0xaa   :  { %v106_v27 = vpop.f32.mrf.mxu0 }
 0x124   :  { %v184_v43 = vpop.f32.mrf.mxu1 }
 0x125   :  { %v188_v44 = vmax.f32 %v184_v43, 0.0 }
 0x127   :  { %v206_v45 = vpack.c.bf16 %v188_v44, %v188_v44 }
 0x129   :  { %263 = vmatmul.bf16.vlgmr.msra.gmra.mxu2 %v206_v45 }
 0x12c   :  { %v186_v46 = vpop.f32.mrf.mxu1 }
 0x1ac   :  { %v264_v54 = vpop.f32.mrf.mxu2 }
 0x1ad   :  { %v268_v55 = vmax.f32 %v264_v54, 0.0 }
 0x1af   :  { %v286_v56 = vpack.c.bf16 %v268_v55, %v268_v55 }
 0x1b1   :  { %343 = vmatmul.bf16.vlgmr.msra.gmra.mxu3 %v286_v56  ;;  %421 = vmatmul.bf16.vlgmr.msrb.gmra.mxu0 %v286_v56 }
 0x1b4   :  { %v266_v57 = vpop.f32.mrf.mxu2 }
 0x22e   :  { %v422_v2 = vpop.f32.mrf.mxu0 }
 0x234   :  { %v344_v5 = vpop.f32.mrf.mxu3 }
 0x235   :  { %v426_v6 = vmul.f32 %v422_v2, %v344_v5 }
 0x236   :  { %v424_v7 = vpop.f32.mrf.mxu0 }
 0x237   :  { %v444_v8 = vpack.c.bf16 %v426_v6, %v426_v6 }
 0x239   :  { %501 = vmatmul.bf16.vlgmr.msrb.gmra.mxu1 %v444_v8 }
 0x23c   :  { %v346_v9 = vpop.f32.mrf.mxu3 }
 0x2b6   :  { %v502_v11 = vpop.f32.mrf.mxu1 }
 0x2b7   :  { %v506_v12 = vmax.f32 %v502_v11, 0.0 }
 0x2b9   :  { %v523_v13 = vpack.c.bf16 %v506_v12, %v506_v12 }
 0x2bb   :  { %580 = vmatmul.bf16.vlgmr.msrb.gmra.mxu2 %v523_v13 }
 0x2be   :  { %v504_v14 = vpop.f32.mrf.mxu1 }
 0x33e   :  { %v581_v15 = vpop.f32.mrf.mxu2 }
 0x33f   :  { %586 = vst.msk [vmem:[%s960_s3] sm:$0x3] %vm585_vm0, %v581_v15 }
 0x346   :  { %v583_v16 = vpop.f32.mrf.mxu2 }
 0x347   :  { %591 = vsyncpa [#allocation3], 1 }

</bundles_post_ra>
